<compile_context>
chip_gen: v5e
topology: v5e:2x2
jax: 0.10.0
libtpu: 0.0.40
codegen_flags: <defaults>
</compile_context>

<pallas_src>
import math

import jax
import jax.numpy as jnp
import numpy as np
from jax.experimental import pallas as pl
from jax.experimental.pallas import tpu as pltpu


def _conv1x1_kernel(w_ref, b_ref, x_ref, o_ref):
    """One grid step: out[i] = W @ x[i] + bias for each batch element in block.

    w_ref: (C_out, C_in)      weight, resident in VMEM (constant block index)
    b_ref: (C_out, 1)         bias
    x_ref: (bt, C_in, S)      input tile (channels sublane, spatial lane)
    o_ref: (bt, C_out, S)     output tile
    """
    w = w_ref[...]
    c_out, s = o_ref.shape[1], o_ref.shape[2]
    # Hoisted once per grid step (JAX does not CSE broadcast_in_dim).
    bias_b = jnp.broadcast_to(b_ref[...], (c_out, s))
    bt = x_ref.shape[0]
    for i in range(bt):  # bt is capped (<= 8) and accumulator-bounded below
        # MXU matmul, default precision, f32 accumulation.
        y = jnp.dot(w, x_ref[i], preferred_element_type=jnp.float32)
        o_ref[i] = (y + bias_b).astype(o_ref.dtype)


def _tpu_vmem_info():
    """(vmem_capacity_bytes, is_small_vmem_part). Conservative on failure."""
    try:
        cap = int(pltpu.get_tpu_info().vmem_capacity_bytes)
    except Exception:
        cap = 64 << 20  # conservative fallback: assume v7x-like part
    # v7x: 64 MiB VMEM per TensorCore and 2 TensorCores per chip;
    # v5e/v6e: 128 MiB and a single TensorCore.
    return cap, cap < (100 << 20)


def _round_up(a, b):
    return (a + b - 1) // b * b


def _pick_tiles(B, C_in, C_out, HW, itemsize, max_block_bytes, two_cores):
    """Choose (bt, hw_tile): lane-dense, VMEM-safe, unroll-bounded."""
    per_lane = (C_in + C_out) * itemsize
    # Spatial tile: full extent if it fits the block budget (always a legal
    # block shape), otherwise a multiple of 128 with a ceil-div grid.
    if HW <= 128 or HW * per_lane <= max_block_bytes:
        hw_tile = HW
    else:
        hw_tile = max(128, (max_block_bytes // per_lane) // 128 * 128)
        hw_tile = min(hw_tile, _round_up(HW, 128))

    # Batch fold: amortize per-step overhead for small H*W, but keep the
    # static unroll tiny and the per-step f32 accumulator footprint small.
    per_b = per_lane * hw_tile
    bt = max(1, min(8, B, max_block_bytes // max(per_b, 1)))
    while bt > 1 and bt * C_out * hw_tile * 4 > (96 << 10):
        bt -= 1
    while bt > 1 and B % bt != 0:
        bt -= 1

    # Two-TensorCore parts (v7x): guarantee >= 2 parallel grid steps.
    if two_cores and pl.cdiv(B, bt) * pl.cdiv(HW, hw_tile) < 2:
        if bt >= 2:
            bt = bt // 2
        elif hw_tile > 128:
            hw_tile = max(128, _round_up(hw_tile // 2, 128))
        # else (B == 1 and HW <= 128): nothing worth splitting.
    return bt, hw_tile


def instance_seg_head_forward(x, weight, bias):
    """x: (B, C_in, H, W) NCHW; weight: (C_out, C_in, 1, 1); bias: (C_out,)."""
    B, C_in, H, W = x.shape
    C_out = weight.shape[0]
    HW = H * W
    itemsize = jnp.dtype(x.dtype).itemsize

    x2 = x.reshape(B, C_in, HW)
    w2 = weight.reshape(C_out, C_in)
    b2 = bias.reshape(C_out, 1)

    _, small_vmem = _tpu_vmem_info()
    # Block budget: ~8 MiB on 64 MiB parts, ~20 MiB on 128 MiB parts.
    max_block_bytes = (8 << 20) if small_vmem else (20 << 20)
    bt, hw_tile = _pick_tiles(B, C_in, C_out, HW, itemsize,
                              max_block_bytes, two_cores=small_vmem)
    grid = (pl.cdiv(B, bt), pl.cdiv(HW, hw_tile))

    # VMEM request: double-buffered in/out tiles + resident weight/bias,
    # with headroom, capped per generation (44 MiB on v7x, 96 MiB on v5e/v6e).
    x_blk = bt * C_in * hw_tile * itemsize
    o_blk = bt * C_out * hw_tile * itemsize
    wb = (C_out * C_in + C_out) * itemsize
    est = 2 * (x_blk + o_blk) + wb + (1 << 20)
    cap = (44 << 20) if small_vmem else (96 << 20)
    vmem_limit = int(min(cap, max(32 << 20, 2 * est)))

    out = pl.pallas_call(
        _conv1x1_kernel,
        out_shape=jax.ShapeDtypeStruct((B, C_out, HW), x.dtype),
        grid=grid,
        in_specs=[
            pl.BlockSpec((C_out, C_in), lambda b, s: (0, 0)),   # weight (resident)
            pl.BlockSpec((C_out, 1), lambda b, s: (0, 0)),      # bias   (resident)
            pl.BlockSpec((bt, C_in, hw_tile), lambda b, s: (b, 0, s)),
        ],
        out_specs=pl.BlockSpec((bt, C_out, hw_tile), lambda b, s: (b, 0, s)),
        compiler_params=pltpu.CompilerParams(
            dimension_semantics=("parallel", "parallel"),
            vmem_limit_bytes=vmem_limit),
    )(w2, b2, x2)
    return out.reshape(B, C_out, H, W)


def instance_seg_head_reference(x, weight, bias):
    """Plain-JAX reference mirroring the PyTorch forward (1x1 Conv2d + bias)."""
    C_out, C_in = weight.shape[0], weight.shape[1]
    w2 = weight.reshape(C_out, C_in)
    y = jnp.einsum("oc,bchw->bohw", w2, x,
                   precision=jax.lax.Precision.HIGHEST)
    return y + bias[None, :, None, None]


if __name__ == "__main__":
    # Shapes consistent with the module defaults: in_chans=54, out_chans=36.
    B, C_in, C_out, H, W = 2, 54, 36, 16, 16

    key = jax.random.PRNGKey(0)
    kx, kw, kb = jax.random.split(key, 3)
    x = jax.random.normal(kx, (B, C_in, H, W), dtype=jnp.float32)
    # Deterministic Conv2d-style init: U(-1/sqrt(fan_in), 1/sqrt(fan_in)).
    bound = 1.0 / math.sqrt(C_in * 1 * 1)
    weight = jax.random.uniform(kw, (C_out, C_in, 1, 1), jnp.float32,
                                -bound, bound)
    bias = jax.random.uniform(kb, (C_out,), jnp.float32, -bound, bound)

    out = instance_seg_head_forward(x, weight, bias)
    out = jax.block_until_ready(out)

    ref = instance_seg_head_reference(x, weight, bias)
    # Default MXU precision rounds operands to bf16 (K=54 accumulation in f32),
    # so compare against the f32 reference with a correspondingly relaxed tol.
    np.testing.assert_allclose(np.asarray(out), np.asarray(ref),
                               rtol=1e-2, atol=1e-2)
    print("KERNEL_OK")
</pallas_src>

<mosaic_0001>
module attributes {stable_mosaic.version = 11 : i64} {
  func.func @_conv1x1_kernel(%arg0: i32, %arg1: i32, %arg2: memref<36x54xf32, #tpu.memory_space<vmem>>, %arg3: memref<36x1xf32, #tpu.memory_space<vmem>>, %arg4: memref<1x54x256xf32, #tpu.memory_space<vmem>>, %arg5: memref<1x36x256xf32, #tpu.memory_space<vmem>>) attributes {dimension_semantics = [#tpu.dimension_semantics<parallel>, #tpu.dimension_semantics<parallel>], iteration_bounds = array<i64: 2, 1>, scalar_prefetch = 0 : i64, scratch_operands = 0 : i64, tpu.core_type = #tpu.core_type<tc>, window_params = [{pipeline_mode = #tpu.pipeline_mode<synchronous>, transform_indices = @transform_0, window_bounds = array<i64: 36, 54>}, {pipeline_mode = #tpu.pipeline_mode<synchronous>, transform_indices = @transform_1, window_bounds = array<i64: 36, 1>}, {transform_indices = @transform_2, window_bounds = array<i64: 1, 54, 256>}, {transform_indices = @transform_3, window_bounds = array<i64: 1, 36, 256>}]} {
    %c0 = arith.constant 0 : index
    %c0_0 = arith.constant 0 : index
    %0 = vector.load %arg2[%c0, %c0_0] : memref<36x54xf32, #tpu.memory_space<vmem>>, vector<36x54xf32>
    %c0_1 = arith.constant 0 : index
    %c0_2 = arith.constant 0 : index
    %1 = vector.load %arg3[%c0_1, %c0_2] : memref<36x1xf32, #tpu.memory_space<vmem>>, vector<36x1xf32>
    %2 = vector.shape_cast %1 : vector<36x1xf32> to vector<36x1xf32>
    %3 = vector.broadcast %2 : vector<36x1xf32> to vector<36x256xf32>
    %c0_3 = arith.constant 0 : index
    %c0_4 = arith.constant 0 : index
    %c0_5 = arith.constant 0 : index
    %4 = vector.load %arg4[%c0_3, %c0_4, %c0_5] : memref<1x54x256xf32, #tpu.memory_space<vmem>>, vector<1x54x256xf32>
    %5 = vector.shape_cast %4 : vector<1x54x256xf32> to vector<54x256xf32>
    %cst = arith.constant dense<0.000000e+00> : vector<36x256xf32>
    %6 = tpu.matmul %0, %5, %cst {dimension_numbers = #tpu.dot_dimension_numbers<[1], [0], [0], [1], [0, 0, 1, 1], [], []>} : vector<36x54xf32>, vector<54x256xf32>, vector<36x256xf32> -> vector<36x256xf32>
    %7 = arith.addf %6, %3 : vector<36x256xf32>
    %c0_6 = arith.constant 0 : index
    %c0_7 = arith.constant 0 : index
    %c0_8 = arith.constant 0 : index
    %8 = vector.load %arg5[%c0_6, %c0_7, %c0_8] : memref<1x36x256xf32, #tpu.memory_space<vmem>>, vector<1x36x256xf32>
    %9 = vector.shape_cast %8 : vector<1x36x256xf32> to vector<36x256xf32>
    %10 = vector.shape_cast %7 : vector<36x256xf32> to vector<1x36x256xf32>
    tpu.vector_store %arg5[%c0_6, %c0_7, %c0_8], %10 {strides = array<i32>} : memref<1x36x256xf32, #tpu.memory_space<vmem>>, vector<1x36x256xf32>,
    return
  }
  func.func @transform_0(%arg0: i32, %arg1: i32) -> (i32, i32) {
    %c0_i32 = arith.constant 0 : i32
    %c0_i32_0 = arith.constant 0 : i32
    %c0_i32_1 = arith.constant 0 : i32
    return %c0_i32, %c0_i32_0 : i32, i32
  }
  func.func @transform_1(%arg0: i32, %arg1: i32) -> (i32, i32) {
    %c0_i32 = arith.constant 0 : i32
    %c0_i32_0 = arith.constant 0 : i32
    %c0_i32_1 = arith.constant 0 : i32
    return %c0_i32, %c0_i32_0 : i32, i32
  }
  func.func @transform_2(%arg0: i32, %arg1: i32) -> (i32, i32, i32) {
    %c0_i32 = arith.constant 0 : i32
    %c0_i32_0 = arith.constant 0 : i32
    return %arg0, %c0_i32, %arg1 : i32, i32, i32
  }
  func.func @transform_3(%arg0: i32, %arg1: i32) -> (i32, i32, i32) {
    %c0_i32 = arith.constant 0 : i32
    %c0_i32_0 = arith.constant 0 : i32
    return %arg0, %c0_i32, %arg1 : i32, i32, i32
  }
}

</mosaic_0001>

<bundles_post_ra>
// kernel: tpu_custom_call.1
= control target key start
LH: loop header
LB: loop body
LE: loop exit
PB: predicated region body
PF: predicated region fallthrough
CT: control target
= control target key end

     0   :  { %s553_s12 = smov 0   ;;  %s555_s13 = smov 0   ;;  %s662_s0 = inlined_call_operand.vmem [shape: f32[36,54], index: 0, kind: input, shape index: {}]   ;;  %s663_s1 = inlined_call_operand.vmem [shape: f32[36,1], index: 1, kind: input, shape index: {}]   ;;  %s664_s2 = inlined_call_operand.vmem [shape: f32[2,54,256], index: 2, kind: input, shape index: {}]   ;;  %s665_s3 = inlined_call_operand.vmem [shape: f32[2,36,256], index: 3, kind: output, shape index: {}]  }
   0x1   :  { %s557_s14 = smov 0  }
   0x2 LB: > { %s25_s15 = sadd.s32 1, %s526_s13  ;;  %p447_p0 = scmp.ge.s32.totalorder %s530_s14, 1  ;;  %s530_s14 = sphi %s557_s14, %s13_s14   ;;  %s526_s13 = sphi %s555_s13, %s667_s13   ;;  %s522_s12 = sphi %s553_s12, %s666_s12  }
   0x3   : > { %p27_p1 = scmp.ge.s32.totalorder %s25_s15, 2  ;;  %p158_p2 = scmp.lt.s32.totalorder %s530_s14, 3 }
   0x5   : > { %s669_s15 = smov (%p27_p1, %s25_s15), 0  ;;  %p159_p3 = pnand %p447_p0, %p158_p2 }
   0x6   : > { %p191_p4 = scmp.lt.s32.totalorder (!%p159_p3), %s522_s12, 1 }
   0x7   : > { %162 = sbr.rel (%p159_p3) target bundleno = 181 (0xb5), region = 32 }
   0xc   : > { %s671_s12 = smov (!%p191_p4, %s522_s12), 1  ;;  %v532_v0 = vmov 0   ;;  %vm275_vm0 = vcmask 1045504   ;;  %v217_v1 = vld [vmem:[%s663_s1 + $0x10] sm:$0xff]  ;;  %v215_v2 = vld [vmem:[%s663_s1] sm:$0xff]  ;;  %vm259_vm1 = vcmask 441344  }
   0xd   : > { %506 = vset.pattern.permute.xlu1 %v532_v0  ;;  %505 = vset.pattern.permute.xlu0 %v532_v0  ;;  %s478_s16 = smul.u32 112, %s671_s12  ;;  %v219_v3 = vld [vmem:[%s663_s1 + $0x20] sm:$0xf]  ;;  %v212_v18 = vld [vmem:[%s662_s0 + $0x10] sm:$0xff]  ;;  %v213_v20 = vld [vmem:[%s662_s0 + $0x18] sm:$0xff] }
   0xe   : > { %507 = vset.pattern.permute.xlu2 %v532_v0  ;;  %232 = vperm.xlu1 %506, %v217_v1   ;;  %v210_v19 = vld [vmem:[%s662_s0] sm:$0xff]  ;;  %v218_v21 = vld [vmem:[%s663_s1 + $0x18] sm:$0xff]  ;;  %v216_v22 = vld [vmem:[%s663_s1 + $0x8] sm:$0xff]  ;;  %s479_s17 = smul.u32 80, %s671_s12 }
   0xf   : > { %s583_s23 = scalar_lea.vmem %s664_s2, %s478_s16  ;;  %222 = vperm.xlu0 %505, %v215_v2   ;;  %242 = vperm.xlu2 %507, %v219_v3   ;;  %v211_v23 = vld [vmem:[%s662_s0 + $0x8] sm:$0xff]  ;;  %v214_v24 = vld [vmem:[%s662_s0 + $0x20] sm:$0xf] }
  0x10   : > { %v257_v4 = vld [vmem:[%s583_s23 + $0x60] sm:$0x3f]  ;;  %v258_v5 = vld [vmem:[%s583_s23 + $0x68] sm:$0x3f]  ;;  %v255_v6 = vld [vmem:[%s583_s23 + $0x50] sm:$0xff]  ;;  %s641_s20 = scalar_lea.vmem %s665_s3, %s479_s17 }
  0x11   : > { %464 = vmatpush.msk.msra.mxu2 %vm275_vm0, %v257_v4  ;;  %456 = vmatpush.msk.msra.mxu1 %vm275_vm0, %v258_v5  ;;  %v256_v7 = vld [vmem:[%s583_s23 + $0x58] sm:$0xff]  ;;  %v253_v8 = vld [vmem:[%s583_s23 + $0x40] sm:$0xff]  ;;  %v254_v9 = vld [vmem:[%s583_s23 + $0x48] sm:$0xff] }
  0x12   : > { %450 = vmatpush.msk.msra.mxu0 %vm275_vm0, %v257_v4  ;;  %471 = vmatpush.msk.msra.mxu3 %vm275_vm0, %v258_v5  ;;  %v251_v10 = vld [vmem:[%s583_s23 + $0x30] sm:$0xff]  ;;  %v252_v11 = vld [vmem:[%s583_s23 + $0x38] sm:$0xff]  ;;  %v249_v12 = vld [vmem:[%s583_s23 + $0x20] sm:$0xff] }
  0x13   : > { %465 = vmatpush.msra.mxu2 %v255_v6  ;;  %324 = vmatpush.msra.mxu1 %v256_v7  ;;  %v250_v13 = vld [vmem:[%s583_s23 + $0x28] sm:$0xff]  ;;  %v247_v14 = vld [vmem:[%s583_s23 + $0x10] sm:$0xff]  ;;  %v248_v15 = vld [vmem:[%s583_s23 + $0x18] sm:$0xff] }
  0x14   : > { %292 = vmatpush.msra.mxu0 %v255_v6  ;;  %472 = vmatpush.msra.mxu3 %v256_v7  ;;  %v245_v16 = vld [vmem:[%s583_s23] sm:$0xff]  ;;  %v246_v17 = vld [vmem:[%s583_s23 + $0x8] sm:$0xff] }
  0x15   : > { %466 = vmatpush.msra.mxu2 %v253_v8  ;;  %325 = vmatpush.msra.mxu1 %v254_v9 }
  0x16   : > { %293 = vmatpush.msra.mxu0 %v253_v8  ;;  %473 = vmatpush.msra.mxu3 %v254_v9 }
  0x17   : > { %467 = vmatpush.msra.mxu2 %v251_v10  ;;  %326 = vmatpush.msra.mxu1 %v252_v11 }
  0x18   : > { %294 = vmatpush.msra.mxu0 %v251_v10  ;;  %474 = vmatpush.msra.mxu3 %v252_v11 }
  0x19   : > { %468 = vmatpush.msra.mxu2 %v249_v12  ;;  %327 = vmatpush.msra.mxu1 %v250_v13 }
  0x1a   : > { %295 = vmatpush.msra.mxu0 %v249_v12  ;;  %475 = vmatpush.msra.mxu3 %v250_v13 }
  0x1b   : > { %469 = vmatpush.msra.mxu2 %v247_v14  ;;  %328 = vmatpush.msra.mxu1 %v248_v15 }
  0x1c   : > { %296 = vmatpush.msra.mxu0 %v247_v14  ;;  %476 = vmatpush.msra.mxu3 %v248_v15 }
  0x1d   : > { %470 = vmatpush.msra.mxu2 %v245_v16  ;;  %329 = vmatpush.msra.mxu1 %v246_v17 }
  0x1e   : > { %453 = vmatmul.msk.f32.vlgmr.msra.gmra.mxu2 %vm259_vm1, %v212_v18  ;;  %457 = vmatmul.msk.f32.vlgmr.msra.gmra.mxu1 %vm259_vm1, %v210_v19 }
  0x1f   : > { %297 = vmatpush.msra.mxu0 %v245_v16  ;;  %477 = vmatpush.msra.mxu3 %v246_v17 }
  0x20   : > { %451 = vmatmul.msk.f32.vlgmr.msra.gmra.mxu0 %vm259_vm1, %v210_v19  ;;  %460 = vmatmul.msk.f32.vlgmr.msra.gmra.mxu3 %vm259_vm1, %v213_v20 }
  0x21   : > { %237 = vperm.xlu1 %506, %v218_v21   ;;  %227 = vperm.xlu0 %505, %v216_v22  }
  0x26   : > { %454 = vmatmul.msk.f32.gmra.mxu2 %vm259_vm1, %v213_v20  ;;  %458 = vmatmul.msk.f32.gmra.mxu1 %vm259_vm1, %v211_v23 }
  0x28   : > { %452 = vmatmul.msk.f32.gmra.mxu0 %vm259_vm1, %v211_v23  ;;  %461 = vmatmul.msk.f32.gmra.mxu3 %vm259_vm1, %v214_v24 }
  0x2e   : > { %455 = vmatmul.msk.f32.gmra.mxu2 %vm259_vm1, %v214_v24  ;;  %459 = vmatmul.msk.f32.gmra.mxu1 %vm259_vm1, %v212_v18 }
  0x69   : > { %v243_v42 = vpop.permute.xlu2 %242 }
  0x80   : > { %v233_v25 = vpop.permute.xlu1 %232 }
  0x81   : > { %v223_v26 = vpop.permute.xlu0 %222 }
  0x93   : > { %v238_v31 = vpop.permute.xlu1 %237  ;;  %v228_v33 = vpop.permute.xlu0 %227 }
  0x9b   : > { %v331_v27 = vpop.f32.mrf.mxu1 }
  0x9c   : > { %v332_v28 = vadd.f32 %v331_v27, %v223_v26 }
  0x9d   : > { %v299_v29 = vpop.f32.mrf.mxu0 }
  0x9e   : > { %347 = vst [vmem:[%s641_s20 + $0x8] sm:$0xff] %v332_v28  ;;  %v300_v30 = vadd.f32 %v299_v29, %v223_v26 }
  0xa0   : > { %346 = vst [vmem:[%s641_s20] sm:$0xff] %v300_v30 }
  0xa1   : > { %v305_v32 = vpop.f32.mrf.mxu2 }
  0xa2   : > { %v306_v34 = vadd.f32 %v305_v32, %v233_v25 }
  0xa3   : > { %v334_v35 = vpop.f32.mrf.mxu1  ;;  %v340_v36 = vpop.f32.mrf.mxu3 }
  0xa4   : > { %350 = vst [vmem:[%s641_s20 + $0x20] sm:$0xff] %v306_v34  ;;  %v335_v37 = vadd.f32 %v334_v35, %v228_v33  ;;  %v341_v38 = vadd.f32 %v340_v36, %v238_v31 }
  0xa5   : > { %v302_v39 = vpop.f32.mrf.mxu0 }
  0xa6   : > { %349 = vst [vmem:[%s641_s20 + $0x18] sm:$0xff] %v335_v37  ;;  %v303_v40 = vadd.f32 %v302_v39, %v228_v33 }
  0xa7   : > { %353 = vst [vmem:[%s641_s20 + $0x38] sm:$0xff] %v341_v38 }
  0xa8   : > { %348 = vst [vmem:[%s641_s20 + $0x10] sm:$0xff] %v303_v40 }
  0xa9   : > { %v308_v41 = vpop.f32.mrf.mxu2 }
  0xaa   : > { %v309_v43 = vadd.f32 %v308_v41, %v238_v31 }
  0xab   : > { %v337_v44 = vpop.f32.mrf.mxu1  ;;  %v343_v45 = vpop.f32.mrf.mxu3 }
  0xac   : > { %352 = vst [vmem:[%s641_s20 + $0x30] sm:$0xff] %v309_v43  ;;  %v338_v46 = vadd.f32 %v337_v44, %v233_v25  ;;  %v344_v47 = vadd.f32 %v343_v45, %v243_v42 }
  0xae   : > { %351 = vst [vmem:[%s641_s20 + $0x28] sm:$0xff] %v338_v46 }
  0xaf   : > { %355 = vst [vmem:[%s641_s20 + $0x48] sm:$0xf] %v344_v47 }
  0xb1   : > { %v311_v48 = vpop.f32.mrf.mxu2 }
  0xb2   : > { %v312_v49 = vadd.f32 %v311_v48, %v243_v42 }
  0xb4   : > { %354 = vst [vmem:[%s641_s20 + $0x40] sm:$0xf] %v312_v49 }
  0xb5 PF: > { %s13_s14 = sadd.s32 1, %s530_s14   ;;  %s666_s12 = smov %s526_s13 }
  0xb6   : > { %p10_p5 = scmp.ge.s32.totalorder %s13_s14, 4   ;;  %s667_s13 = smov %s669_s15 }
  0xb8   :  { %12 = sbr.rel (!%p10_p5) target bundleno = 2 (0x2), region = 62 }

</bundles_post_ra>
